<compile_context>
chip_gen: v5e
topology: v5e:2x2
jax: 0.10.0
libtpu: 0.0.40
codegen_flags: <defaults>
</compile_context>

<pallas_src>
import jax
import jax.numpy as jnp
from jax import lax
from jax.experimental import pallas as pl
from jax.experimental.pallas import tpu as pltpu

EPS = 1e-5     # BatchNorm eps (PyTorch default)
_HALO = 8      # sublane-aligned H halo so every scratch store is 8-row aligned


# --------------------------------------------------------------------------- #
# Fused kernel
# --------------------------------------------------------------------------- #
def _resblock_kernel(x_ref, w1_ref, s1_ref, w2_ref, s2_ref, w3_ref, s3_ref,
                     o_ref, pad_ref):
    # x_ref : (1, H, W*Cin)      bf16  activations, lane-dense (w-major, c-minor)
    # w1_ref: (W*Cin, W*Cm)      bf16  1x1 conv as block-diagonal matmul
    # s1_ref: (2, W*Cm)          f32   folded BN1 [scale; shift], tiled over W
    # w2_ref: (3*W*Cm, W*Cm)     bf16  3x3 conv: 3 stacked block-Toeplitz bands
    # s2_ref: (2, W*Cm)          f32
    # w3_ref: (W*Cm, W*Cout)     bf16  1x1 conv as block-diagonal matmul
    # s3_ref: (2, W*Cout)        f32
    # o_ref : (1, H, W*Cout)     f32
    # pad_ref: (H + 2*_HALO, W*Cm) f32 scratch (H halo for the 3x3 conv)
    H = o_ref.shape[1]
    wc = pad_ref.shape[1]

    x = x_ref[0]                                            # (H, W*Cin) bf16

    # ---- conv1 (1x1) + BN1 + ReLU: one lane-dense MXU matmul ----------------
    h1 = jnp.dot(x, w1_ref[...], preferred_element_type=jnp.float32)
    h1 = jnp.maximum(h1 * s1_ref[0:1, :] + s1_ref[1:2, :], 0.0)

    # ---- stage into the H-haloed VMEM scratch (all stores 8-row aligned) ----
    pad_ref[0:_HALO, :] = jnp.zeros((_HALO, wc), jnp.float32)
    pad_ref[_HALO + H:_HALO + H + _HALO, :] = jnp.zeros((_HALO, wc), jnp.float32)
    pad_ref[_HALO:_HALO + H, :] = h1

    # ---- conv2 (3x3, pad 1) + BN2 + ReLU: one deep MXU matmul ---------------
    # Three H-shifted views concatenated on the lane axis (each 128-lane
    # aligned); the W-axis taps and W-boundary zeros live inside the
    # block-Toeplitz weight, so no W shifts are needed in-kernel.
    x2 = jnp.concatenate(
        [pad_ref[_HALO - 1:_HALO - 1 + H, :],   # rows h-1 (zero above top)
         pad_ref[_HALO:_HALO + H, :],           # rows h
         pad_ref[_HALO + 1:_HALO + 1 + H, :]],  # rows h+1 (zero below bottom)
        axis=1,
    ).astype(jnp.bfloat16)                                  # (H, 3*W*Cm)
    h2 = jnp.dot(x2, w2_ref[...], preferred_element_type=jnp.float32)
    h2 = jnp.maximum(h2 * s2_ref[0:1, :] + s2_ref[1:2, :], 0.0)

    # ---- conv3 (1x1) + BN3 --------------------------------------------------
    h3 = jnp.dot(h2.astype(jnp.bfloat16), w3_ref[...],
                 preferred_element_type=jnp.float32)
    h3 = h3 * s3_ref[0:1, :] + s3_ref[1:2, :]

    # ---- residual add + ReLU (f32 epilogue), lane-dense 128-wide store ------
    out = jnp.maximum(h3 + x.astype(jnp.float32), 0.0)
    o_ref[...] = out[None, :, :].astype(o_ref.dtype)


# --------------------------------------------------------------------------- #
# Wrapper-side layout plumbing (trace-time, tiny arrays)
# --------------------------------------------------------------------------- #
def _fold_bn(bn):
    scale = bn["gamma"] * lax.rsqrt(bn["var"] + EPS)
    shift = bn["beta"] - bn["mean"] * scale
    return scale, shift


def _pack_params(p, W):
    """Build lane-dense (W folded into lanes) weight / BN operands."""
    c_m = p["w1"].shape[1]
    eye_w = jnp.eye(W, dtype=jnp.float32)

    w1_bd = jnp.kron(eye_w, p["w1"])                        # (W*Cin, W*Cm)
    w3_bd = jnp.kron(eye_w, p["w3"])                        # (W*Cm, W*Cout)

    # 3x3 conv: per H-tap dy, a block-Toeplitz band over W carries the three
    # dx taps; band truncation at the matrix edges implements the W zero pad.
    blocks = []
    for dy in range(3):
        b = jnp.zeros((W * c_m, W * c_m), jnp.float32)
        for dx in range(3):
            b = b + jnp.kron(jnp.eye(W, k=1 - dx, dtype=jnp.float32),
                             p["w2"][dy, dx])
        blocks.append(b)
    w2_big = jnp.concatenate(blocks, axis=0)                # (3*W*Cm, W*Cm)

    def bn_op(bn):
        scale, shift = _fold_bn(bn)
        return jnp.stack([jnp.tile(scale, W), jnp.tile(shift, W)])  # (2, W*C)

    return {
        "w1": w1_bd.astype(jnp.bfloat16),
        "w2": w2_big.astype(jnp.bfloat16),
        "w3": w3_bd.astype(jnp.bfloat16),
        "s1": bn_op(p["bn1"]).astype(jnp.float32),
        "s2": bn_op(p["bn2"]).astype(jnp.float32),
        "s3": bn_op(p["bn3"]).astype(jnp.float32),
    }


def resblock_forward(x_nchw, params):
    """ResBlock forward (stride=1, i_downsample=None).  NCHW in/out, f32."""
    B, C_in, H, W = x_nchw.shape
    C_mid = params["w1"].shape[1]
    C_out = params["w3"].shape[1]
    assert C_in == C_out, "identity path needs in_channels == out_channels"

    dp = _pack_params(params, W)

    # NCHW -> NHWC -> fold W into the lane axis (free reshape); bf16
    # activations halve HBM traffic, all math stays f32-accumulated in-kernel.
    x = jnp.transpose(x_nchw, (0, 2, 3, 1)).reshape(B, H, W * C_in)
    x = x.astype(jnp.bfloat16)

    y = pl.pallas_call(
        _resblock_kernel,
        out_shape=jax.ShapeDtypeStruct((B, H, W * C_out), jnp.float32),
        grid_spec=pltpu.PrefetchScalarGridSpec(
            num_scalar_prefetch=0,
            grid=(B,),
            in_specs=[
                pl.BlockSpec((1, H, W * C_in), lambda b: (b, 0, 0)),
                pl.BlockSpec((W * C_in, W * C_mid), lambda b: (0, 0)),
                pl.BlockSpec((2, W * C_mid), lambda b: (0, 0)),
                pl.BlockSpec((3 * W * C_mid, W * C_mid), lambda b: (0, 0)),
                pl.BlockSpec((2, W * C_mid), lambda b: (0, 0)),
                pl.BlockSpec((W * C_mid, W * C_out), lambda b: (0, 0)),
                pl.BlockSpec((2, W * C_out), lambda b: (0, 0)),
            ],
            out_specs=pl.BlockSpec((1, H, W * C_out), lambda b: (b, 0, 0)),
            scratch_shapes=[
                pltpu.VMEM((H + 2 * _HALO, W * C_mid), jnp.float32)],
        ),
        compiler_params=pltpu.CompilerParams(
            dimension_semantics=("parallel",)),
    )(x, dp["w1"], dp["s1"], dp["w2"], dp["s2"], dp["w3"], dp["s3"])

    return jnp.transpose(y.reshape(B, H, W, C_out), (0, 3, 1, 2))


# --------------------------------------------------------------------------- #
# Synthetic params + pure-JAX reference
# --------------------------------------------------------------------------- #
def init_resblock_params(key, c_in, c_out):
    kw1, kw2, kw3, kb1, kb2, kb3 = jax.random.split(key, 6)

    def bn(k, c):
        k1, k2, k3, k4 = jax.random.split(k, 4)
        return {
            "gamma": 1.0 + 0.1 * jax.random.normal(k1, (c,), jnp.float32),
            "beta": 0.1 * jax.random.normal(k2, (c,), jnp.float32),
            "mean": 0.1 * jax.random.normal(k3, (c,), jnp.float32),
            "var": jax.random.uniform(k4, (c,), jnp.float32, 0.5, 1.5),
        }

    return {
        "w1": 0.1 * jax.random.normal(kw1, (c_in, c_out), jnp.float32),
        "w2": 0.1 * jax.random.normal(kw2, (3, 3, c_out, c_out), jnp.float32),
        "w3": 0.1 * jax.random.normal(kw3, (c_out, c_out), jnp.float32),
        "bn1": bn(kb1, c_out),
        "bn2": bn(kb2, c_out),
        "bn3": bn(kb3, c_out),
    }


def _reference_resblock(x_nchw, p):
    """Pure-JAX f32 reference (eval-mode BN), NHWC convs at highest precision."""
    x = jnp.transpose(x_nchw, (0, 2, 3, 1)).astype(jnp.float32)
    hp = lax.Precision.HIGHEST

    def bn(v, bnp):
        scale, shift = _fold_bn(bnp)
        return v * scale + shift

    h = jnp.einsum("bhwc,co->bhwo", x, p["w1"], precision=hp)
    h = jnp.maximum(bn(h, p["bn1"]), 0.0)
    h = lax.conv_general_dilated(
        h, p["w2"], window_strides=(1, 1), padding=[(1, 1), (1, 1)],
        dimension_numbers=("NHWC", "HWIO", "NHWC"), precision=hp)
    h = jnp.maximum(bn(h, p["bn2"]), 0.0)
    h = jnp.einsum("bhwc,co->bhwo", h, p["w3"], precision=hp)
    h = bn(h, p["bn3"])
    out = jnp.maximum(h + x, 0.0)
    return jnp.transpose(out, (0, 3, 1, 2))


if __name__ == "__main__":
    # W * C == 128 -> exactly one full lane tile per row.
    B, C, H, W = 2, 8, 16, 16
    OUT_C = 8   # identity path (i_downsample=None) requires C == OUT_C

    key = jax.random.PRNGKey(0)
    kx, kp = jax.random.split(key)
    x = jax.random.normal(kx, (B, C, H, W), dtype=jnp.float32)
    params = init_resblock_params(kp, C, OUT_C)

    y = jax.jit(resblock_forward)(x, params)
    y = jax.block_until_ready(y)

    y_ref = _reference_resblock(x, params)
    assert y.shape == (B, OUT_C, H, W), y.shape
    max_err = float(jnp.max(jnp.abs(y - y_ref)))
    assert jnp.allclose(y, y_ref, atol=5e-2, rtol=5e-2), max_err

    print("KERNEL_OK")
</pallas_src>

<mosaic_0001>
module attributes {stable_mosaic.version = 11 : i64} {
  func.func @_resblock_kernel(%arg0: i32, %arg1: memref<1x16x128xbf16, #tpu.memory_space<vmem>>, %arg2: memref<128x128xbf16, #tpu.memory_space<vmem>>, %arg3: memref<2x128xf32, #tpu.memory_space<vmem>>, %arg4: memref<384x128xbf16, #tpu.memory_space<vmem>>, %arg5: memref<2x128xf32, #tpu.memory_space<vmem>>, %arg6: memref<128x128xbf16, #tpu.memory_space<vmem>>, %arg7: memref<2x128xf32, #tpu.memory_space<vmem>>, %arg8: memref<1x16x128xf32, #tpu.memory_space<vmem>>, %arg9: memref<32x128xf32, #tpu.memory_space<vmem>>) attributes {dimension_semantics = [#tpu.dimension_semantics<parallel>], iteration_bounds = array<i64: 2>, scalar_prefetch = 0 : i64, scratch_operands = 1 : i64, tpu.core_type = #tpu.core_type<tc>, window_params = [{transform_indices = @transform_0, window_bounds = array<i64: 1, 16, 128>}, {pipeline_mode = #tpu.pipeline_mode<synchronous>, transform_indices = @transform_1, window_bounds = array<i64: 128, 128>}, {pipeline_mode = #tpu.pipeline_mode<synchronous>, transform_indices = @transform_2, window_bounds = array<i64: 2, 128>}, {pipeline_mode = #tpu.pipeline_mode<synchronous>, transform_indices = @transform_3, window_bounds = array<i64: 384, 128>}, {pipeline_mode = #tpu.pipeline_mode<synchronous>, transform_indices = @transform_4, window_bounds = array<i64: 2, 128>}, {pipeline_mode = #tpu.pipeline_mode<synchronous>, transform_indices = @transform_5, window_bounds = array<i64: 128, 128>}, {pipeline_mode = #tpu.pipeline_mode<synchronous>, transform_indices = @transform_6, window_bounds = array<i64: 2, 128>}, {transform_indices = @transform_7, window_bounds = array<i64: 1, 16, 128>}]} {
    %c0 = arith.constant 0 : index
    %c0_0 = arith.constant 0 : index
    %c0_1 = arith.constant 0 : index
    %0 = vector.load %arg1[%c0, %c0_0, %c0_1] : memref<1x16x128xbf16, #tpu.memory_space<vmem>>, vector<1x16x128xbf16>
    %1 = vector.shape_cast %0 : vector<1x16x128xbf16> to vector<16x128xbf16>
    %c0_2 = arith.constant 0 : index
    %c0_3 = arith.constant 0 : index
    %2 = vector.load %arg2[%c0_2, %c0_3] : memref<128x128xbf16, #tpu.memory_space<vmem>>, vector<128x128xbf16>
    %cst = arith.constant dense<0.000000e+00> : vector<16x128xf32>
    %3 = tpu.matmul %1, %2, %cst {dimension_numbers = #tpu.dot_dimension_numbers<[1], [0], [0], [1], [0, 0, 1, 1], [], []>} : vector<16x128xbf16>, vector<128x128xbf16>, vector<16x128xf32> -> vector<16x128xf32>
    %c0_4 = arith.constant 0 : index
    %c0_5 = arith.constant 0 : index
    %4 = vector.load %arg3[%c0_4, %c0_5] : memref<2x128xf32, #tpu.memory_space<vmem>>, vector<1x128xf32>
    %5 = vector.broadcast %4 : vector<1x128xf32> to vector<16x128xf32>
    %6 = arith.mulf %3, %5 : vector<16x128xf32>
    %c1 = arith.constant 1 : index
    %c0_6 = arith.constant 0 : index
    %7 = vector.load %arg3[%c1, %c0_6] : memref<2x128xf32, #tpu.memory_space<vmem>>, vector<1x128xf32>
    %8 = vector.broadcast %7 : vector<1x128xf32> to vector<16x128xf32>
    %9 = arith.addf %6, %8 : vector<16x128xf32>
    %cst_7 = arith.constant 0.000000e+00 : f32
    %10 = vector.broadcast %cst_7 : f32 to vector<16x128xf32>
    %11 = arith.maximumf %9, %10 : vector<16x128xf32>
    %cst_8 = arith.constant 0.000000e+00 : f32
    %12 = vector.broadcast %cst_8 : f32 to vector<8x128xf32>
    %c0_9 = arith.constant 0 : index
    %c0_10 = arith.constant 0 : index
    %13 = vector.load %arg9[%c0_9, %c0_10] : memref<32x128xf32, #tpu.memory_space<vmem>>, vector<8x128xf32>
    tpu.vector_store %arg9[%c0_9, %c0_10], %12 {strides = array<i32>} : memref<32x128xf32, #tpu.memory_space<vmem>>, vector<8x128xf32>,
    %cst_11 = arith.constant 0.000000e+00 : f32
    %14 = vector.broadcast %cst_11 : f32 to vector<8x128xf32>
    %c24 = arith.constant 24 : index
    %c0_12 = arith.constant 0 : index
    %15 = vector.load %arg9[%c24, %c0_12] : memref<32x128xf32, #tpu.memory_space<vmem>>, vector<8x128xf32>
    tpu.vector_store %arg9[%c24, %c0_12], %14 {strides = array<i32>} : memref<32x128xf32, #tpu.memory_space<vmem>>, vector<8x128xf32>,
    %c8 = arith.constant 8 : index
    %c0_13 = arith.constant 0 : index
    %16 = vector.load %arg9[%c8, %c0_13] : memref<32x128xf32, #tpu.memory_space<vmem>>, vector<16x128xf32>
    tpu.vector_store %arg9[%c8, %c0_13], %11 {strides = array<i32>} : memref<32x128xf32, #tpu.memory_space<vmem>>, vector<16x128xf32>,
    %c7 = arith.constant 7 : index
    %c0_14 = arith.constant 0 : index
    %17 = vector.load %arg9[%c7, %c0_14] : memref<32x128xf32, #tpu.memory_space<vmem>>, vector<16x128xf32>
    %c8_15 = arith.constant 8 : index
    %c0_16 = arith.constant 0 : index
    %18 = vector.load %arg9[%c8_15, %c0_16] : memref<32x128xf32, #tpu.memory_space<vmem>>, vector<16x128xf32>
    %c9 = arith.constant 9 : index
    %c0_17 = arith.constant 0 : index
    %19 = vector.load %arg9[%c9, %c0_17] : memref<32x128xf32, #tpu.memory_space<vmem>>, vector<16x128xf32>
    %20 = tpu.concatenate %17, %18, %19 in 1 : vector<16x128xf32>, vector<16x128xf32>, vector<16x128xf32> -> vector<16x384xf32>
    %21 = arith.truncf %20 : vector<16x384xf32> to vector<16x384xbf16>
    %c0_18 = arith.constant 0 : index
    %c0_19 = arith.constant 0 : index
    %22 = vector.load %arg4[%c0_18, %c0_19] : memref<384x128xbf16, #tpu.memory_space<vmem>>, vector<384x128xbf16>
    %cst_20 = arith.constant dense<0.000000e+00> : vector<16x128xf32>
    %23 = tpu.matmul %21, %22, %cst_20 {dimension_numbers = #tpu.dot_dimension_numbers<[1], [0], [0], [1], [0, 0, 1, 1], [], []>} : vector<16x384xbf16>, vector<384x128xbf16>, vector<16x128xf32> -> vector<16x128xf32>
    %c0_21 = arith.constant 0 : index
    %c0_22 = arith.constant 0 : index
    %24 = vector.load %arg5[%c0_21, %c0_22] : memref<2x128xf32, #tpu.memory_space<vmem>>, vector<1x128xf32>
    %25 = vector.broadcast %24 : vector<1x128xf32> to vector<16x128xf32>
    %26 = arith.mulf %23, %25 : vector<16x128xf32>
    %c1_23 = arith.constant 1 : index
    %c0_24 = arith.constant 0 : index
    %27 = vector.load %arg5[%c1_23, %c0_24] : memref<2x128xf32, #tpu.memory_space<vmem>>, vector<1x128xf32>
    %28 = vector.broadcast %27 : vector<1x128xf32> to vector<16x128xf32>
    %29 = arith.addf %26, %28 : vector<16x128xf32>
    %cst_25 = arith.constant 0.000000e+00 : f32
    %30 = vector.broadcast %cst_25 : f32 to vector<16x128xf32>
    %31 = arith.maximumf %29, %30 : vector<16x128xf32>
    %32 = arith.truncf %31 : vector<16x128xf32> to vector<16x128xbf16>
    %c0_26 = arith.constant 0 : index
    %c0_27 = arith.constant 0 : index
    %33 = vector.load %arg6[%c0_26, %c0_27] : memref<128x128xbf16, #tpu.memory_space<vmem>>, vector<128x128xbf16>
    %cst_28 = arith.constant dense<0.000000e+00> : vector<16x128xf32>
    %34 = tpu.matmul %32, %33, %cst_28 {dimension_numbers = #tpu.dot_dimension_numbers<[1], [0], [0], [1], [0, 0, 1, 1], [], []>} : vector<16x128xbf16>, vector<128x128xbf16>, vector<16x128xf32> -> vector<16x128xf32>
    %c0_29 = arith.constant 0 : index
    %c0_30 = arith.constant 0 : index
    %35 = vector.load %arg7[%c0_29, %c0_30] : memref<2x128xf32, #tpu.memory_space<vmem>>, vector<1x128xf32>
    %36 = vector.broadcast %35 : vector<1x128xf32> to vector<16x128xf32>
    %37 = arith.mulf %34, %36 : vector<16x128xf32>
    %c1_31 = arith.constant 1 : index
    %c0_32 = arith.constant 0 : index
    %38 = vector.load %arg7[%c1_31, %c0_32] : memref<2x128xf32, #tpu.memory_space<vmem>>, vector<1x128xf32>
    %39 = vector.broadcast %38 : vector<1x128xf32> to vector<16x128xf32>
    %40 = arith.addf %37, %39 : vector<16x128xf32>
    %41 = arith.extf %1 : vector<16x128xbf16> to vector<16x128xf32>
    %42 = arith.addf %40, %41 : vector<16x128xf32>
    %cst_33 = arith.constant 0.000000e+00 : f32
    %43 = vector.broadcast %cst_33 : f32 to vector<16x128xf32>
    %44 = arith.maximumf %42, %43 : vector<16x128xf32>
    %45 = vector.shape_cast %44 : vector<16x128xf32> to vector<1x16x128xf32>
    %c0_34 = arith.constant 0 : index
    %c0_35 = arith.constant 0 : index
    %c0_36 = arith.constant 0 : index
    %46 = vector.load %arg8[%c0_34, %c0_35, %c0_36] : memref<1x16x128xf32, #tpu.memory_space<vmem>>, vector<1x16x128xf32>
    tpu.vector_store %arg8[%c0_34, %c0_35, %c0_36], %45 {strides = array<i32>} : memref<1x16x128xf32, #tpu.memory_space<vmem>>, vector<1x16x128xf32>,
    return
  }
  func.func @transform_0(%arg0: i32) -> (i32, i32, i32) {
    %c0_i32 = arith.constant 0 : i32
    %c0_i32_0 = arith.constant 0 : i32
    %c0_i32_1 = arith.constant 0 : i32
    return %arg0, %c0_i32, %c0_i32_0 : i32, i32, i32
  }
  func.func @transform_1(%arg0: i32) -> (i32, i32) {
    %c0_i32 = arith.constant 0 : i32
    %c0_i32_0 = arith.constant 0 : i32
    %c0_i32_1 = arith.constant 0 : i32
    return %c0_i32, %c0_i32_0 : i32, i32
  }
  func.func @transform_2(%arg0: i32) -> (i32, i32) {
    %c0_i32 = arith.constant 0 : i32
    %c0_i32_0 = arith.constant 0 : i32
    %c0_i32_1 = arith.constant 0 : i32
    return %c0_i32, %c0_i32_0 : i32, i32
  }
  func.func @transform_3(%arg0: i32) -> (i32, i32) {
    %c0_i32 = arith.constant 0 : i32
    %c0_i32_0 = arith.constant 0 : i32
    %c0_i32_1 = arith.constant 0 : i32
    return %c0_i32, %c0_i32_0 : i32, i32
  }
  func.func @transform_4(%arg0: i32) -> (i32, i32) {
    %c0_i32 = arith.constant 0 : i32
    %c0_i32_0 = arith.constant 0 : i32
    %c0_i32_1 = arith.constant 0 : i32
    return %c0_i32, %c0_i32_0 : i32, i32
  }
  func.func @transform_5(%arg0: i32) -> (i32, i32) {
    %c0_i32 = arith.constant 0 : i32
    %c0_i32_0 = arith.constant 0 : i32
    %c0_i32_1 = arith.constant 0 : i32
    return %c0_i32, %c0_i32_0 : i32, i32
  }
  func.func @transform_6(%arg0: i32) -> (i32, i32) {
    %c0_i32 = arith.constant 0 : i32
    %c0_i32_0 = arith.constant 0 : i32
    %c0_i32_1 = arith.constant 0 : i32
    return %c0_i32, %c0_i32_0 : i32, i32
  }
  func.func @transform_7(%arg0: i32) -> (i32, i32, i32) {
    %c0_i32 = arith.constant 0 : i32
    %c0_i32_0 = arith.constant 0 : i32
    %c0_i32_1 = arith.constant 0 : i32
    return %arg0, %c0_i32, %c0_i32_0 : i32, i32, i32
  }
}

</mosaic_0001>

<bundles_post_ra>
// kernel: tile.33
= control target key start
LH: loop header
LB: loop body
LE: loop exit
PB: predicated region body
PF: predicated region fallthrough
CT: control target
= control target key end

     0   :  { %s28_s0 = inlined_call_operand.vmem [shape: f32[8], index: 0, kind: input, shape index: {}]   ;;  %s29_s1 = inlined_call_operand.vmem [shape: f32[16,8], index: 1, kind: output, shape index: {}]  }
   0x1   :  { %v4_v0 = vld [vmem:[%s28_s0] ss:$0 sm:$0xff] }
   0x2   :  { %5 = vst [vmem:[%s29_s1] sm:$0xff] %v4_v0 }
   0x3   :  { %8 = vst [vmem:[%s29_s1 + $0x8] sm:$0xff] %v4_v0 }

// kernel: tile.38
= control target key start
LH: loop header
LB: loop body
LE: loop exit
PB: predicated region body
PF: predicated region fallthrough
CT: control target
= control target key end

     0   :  { %s131_s10 = smov 120   ;;  %s132_s11 = smov 104   ;;  %vm3_vm0 = vcmask 64512   ;;  %vm9_vm1 = vcmask 1048512   ;;  %vm15_vm2 = vcmask 982912   ;;  %vm21_vm3 = vcmask 917312   ;;  %s207_s0 = inlined_call_operand.vmem [shape: f32[16,8], index: 0, kind: input, shape index: {}]   ;;  %s208_s1 = inlined_call_operand.vmem [shape: f32[1,128], index: 1, kind: output, shape index: {}]  }
   0x1   :  { %v101_v0 = vld [vmem:[%s207_s0 + $0xf] sm:$0x1]   ;;  %v103_v1 = vld [vmem:[%s207_s0 + $0xd] sm:$0x1]   ;;  %v105_v2 = vld [vmem:[%s207_s0 + $0xb] sm:$0x1]  }
   0x2   :  { %7 = vrot.lane.b32.xlu0 %v101_v0, %s131_s10  ;;  %19 = vrot.lane.b32.xlu1 %v103_v1, %s132_s11  ;;  %s133_s14 = smov 88   ;;  %v102_v3 = vld [vmem:[%s207_s0 + $0xe] sm:$0x1]   ;;  %v104_v4 = vld [vmem:[%s207_s0 + $0xc] sm:$0x1]   ;;  %s134_s19 = smov 112  }
   0x3   :  { %31 = vrot.lane.b32.xlu2 %v105_v2, %s133_s14  ;;  %s135_s20 = smov 96   ;;  %v106_v5 = vld [vmem:[%s207_s0 + $0xa] sm:$0x1]   ;;  %s136_s23 = smov 80   ;;  %v107_v6 = vld [vmem:[%s207_s0 + $0x9] sm:$0x1]  }
   0x4   :  { %v108_v7 = vld [vmem:[%s207_s0 + $0x8] sm:$0x1]   ;;  %s137_s28 = smov 72   ;;  %s138_s29 = smov 64   ;;  %v109_v8 = vld [vmem:[%s207_s0 + $0x7] sm:$0x1]  }
   0x5   :  { %s139_s3 = smov 56   ;;  %v110_v9 = vld [vmem:[%s207_s0 + $0x6] sm:$0x1]   ;;  %v111_v10 = vld [vmem:[%s207_s0 + $0x5] sm:$0x1]   ;;  %s140_s8 = smov 48  }
   0x6   :  { %s141_s9 = smov 40   ;;  %v112_v11 = vld [vmem:[%s207_s0 + $0x4] sm:$0x1]   ;;  %s142_s12 = smov 32   ;;  %v113_v12 = vld [vmem:[%s207_s0 + $0x3] sm:$0x1]  }
   0x7   :  { %v114_v13 = vld [vmem:[%s207_s0 + $0x2] sm:$0x1]   ;;  %s143_s17 = smov 24   ;;  %s144_s18 = smov 16   ;;  %v115_v14 = vld [vmem:[%s207_s0 + $0x1] sm:$0x1]  }
   0x8   :  { %s145_s21 = smov 8   ;;  %v2_v15 = vld [vmem:[%s207_s0] sm:$0x1]   ;;  %vm27_vm4 = vcmask 851712   ;;  %vm33_vm5 = vcmask 786112   ;;  %vm39_vm6 = vcmask 720512  }
   0x9   :  { %4 = vst.msk [vmem:[#allocation0] sm:$0x1] %vm3_vm0, %v2_v15   ;;  %vm45_vm7 = vcmask 654912   ;;  %vm51_vm8 = vcmask 589312   ;;  %vm57_vm9 = vcmask 523712   ;;  %vm63_vm10 = vcmask 458112  }
   0xa   :  { %13 = vrot.lane.b32.xlu0 %v102_v3, %s134_s19  ;;  %25 = vrot.lane.b32.xlu1 %v104_v4, %s135_s20  ;;  %vm69_vm11 = vcmask 392512   ;;  %vm75_vm12 = vcmask 326912   ;;  %vm81_vm13 = vcmask 261312   ;;  %vm87_vm14 = vcmask 195712  }
   0xb   :  { %37 = vrot.lane.b32.xlu2 %v106_v5, %s136_s23  ;;  %vm93_vm15 = vcmask 130112  }
  0x12   :  { %43 = vrot.lane.b32.xlu0 %v107_v6, %s137_s28  ;;  %49 = vrot.lane.b32.xlu1 %v108_v7, %s138_s29 }
  0x13   :  { %55 = vrot.lane.b32.xlu2 %v109_v8, %s139_s3 }
  0x1a   :  { %61 = vrot.lane.b32.xlu0 %v110_v9, %s140_s8  ;;  %67 = vrot.lane.b32.xlu1 %v111_v10, %s141_s9 }
  0x1b   :  { %73 = vrot.lane.b32.xlu2 %v112_v11, %s142_s12 }
  0x22   :  { %79 = vrot.lane.b32.xlu0 %v113_v12, %s143_s17  ;;  %85 = vrot.lane.b32.xlu1 %v114_v13, %s144_s18 }
  0x23   :  { %91 = vrot.lane.b32.xlu2 %v115_v14, %s145_s21 }
  0x5d   :  { %v32_v16 = vpop.permute.xlu2 %31  }
  0x65   :  { %v38_v17 = vpop.permute.xlu2 %37  }
  0x6d   :  { %v56_v18 = vpop.permute.xlu2 %55  }
  0x74   :  { %v8_v19 = vpop.permute.xlu0 %7   ;;  %v20_v20 = vpop.permute.xlu1 %19  }
  0x75   :  { %10 = vst.msk [vmem:[#allocation0] sm:$0x1] %vm9_vm1, %v8_v19   ;;  %v74_v21 = vpop.permute.xlu2 %73  }
  0x7c   :  { %v14_v22 = vpop.permute.xlu0 %13   ;;  %v26_v23 = vpop.permute.xlu1 %25  }
  0x7d   :  { %16 = vst.msk [vmem:[#allocation0] sm:$0x1] %vm15_vm2, %v14_v22   ;;  %v92_v24 = vpop.permute.xlu2 %91  }
  0x7e   :  { %22 = vst.msk [vmem:[#allocation0] sm:$0x1] %vm21_vm3, %v20_v20  }
  0x7f   :  { %28 = vst.msk [vmem:[#allocation0] sm:$0x1] %vm27_vm4, %v26_v23  }
  0x80   :  { %34 = vst.msk [vmem:[#allocation0] sm:$0x1] %vm33_vm5, %v32_v16  }
  0x81   :  { %40 = vst.msk [vmem:[#allocation0] sm:$0x1] %vm39_vm6, %v38_v17  }
  0x84   :  { %v44_v25 = vpop.permute.xlu0 %43   ;;  %v50_v26 = vpop.permute.xlu1 %49  }
  0x85   :  { %46 = vst.msk [vmem:[#allocation0] sm:$0x1] %vm45_vm7, %v44_v25  }
  0x86   :  { %52 = vst.msk [vmem:[#allocation0] sm:$0x1] %vm51_vm8, %v50_v26  }
  0x87   :  { %58 = vst.msk [vmem:[#allocation0] sm:$0x1] %vm57_vm9, %v56_v18  }
  0x8c   :  { %v62_v27 = vpop.permute.xlu0 %61   ;;  %v68_v28 = vpop.permute.xlu1 %67  }
  0x8d   :  { %64 = vst.msk [vmem:[#allocation0] sm:$0x1] %vm63_vm10, %v62_v27  }
  0x8e   :  { %70 = vst.msk [vmem:[#allocation0] sm:$0x1] %vm69_vm11, %v68_v28  }
  0x8f   :  { %76 = vst.msk [vmem:[#allocation0] sm:$0x1] %vm75_vm12, %v74_v21  }
  0x94   :  { %v80_v29 = vpop.permute.xlu0 %79   ;;  %v86_v30 = vpop.permute.xlu1 %85  }
  0x95   :  { %82 = vst.msk [vmem:[#allocation0] sm:$0x1] %vm81_vm13, %v80_v29  }
  0x96   :  { %88 = vst.msk [vmem:[#allocation0] sm:$0x1] %vm87_vm14, %v86_v30  }
  0x97   :  { %94 = vst.msk [vmem:[#allocation0] sm:$0x1] %vm93_vm15, %v92_v24  }
  0x9e   :  { %v97_v31 = vld [vmem:[#allocation0] sm:$0x1] }
  0x9f   :  { %100 = vst [vmem:[%s208_s1] sm:$0x1] %v97_v31 }

// kernel: resblock_forward.1
= control target key start
LH: loop header
LB: loop body
LE: loop exit
PB: predicated region body
PF: predicated region fallthrough
CT: control target
= control target key end

     0   :  { %s1064_s24 = smov 0   ;;  %s1227_s0 = inlined_call_operand.vmem [shape: bf16[2,16,128], index: 0, kind: input, shape index: {}]   ;;  %s1228_s1 = inlined_call_operand.vmem [shape: bf16[128,128], index: 1, kind: input, shape index: {}]   ;;  %s1229_s2 = inlined_call_operand.vmem [shape: f32[2,128], index: 2, kind: input, shape index: {}]   ;;  %s1230_s3 = inlined_call_operand.vmem [shape: bf16[384,128], index: 3, kind: input, shape index: {}]   ;;  %s1231_s4 = inlined_call_operand.vmem [shape: f32[2,128], index: 4, kind: input, shape index: {}]   ;;  %s1232_s5 = inlined_call_operand.vmem [shape: bf16[128,128], index: 5, kind: input, shape index: {}]   ;;  %s1233_s6 = inlined_call_operand.vmem [shape: f32[2,128], index: 6, kind: input, shape index: {}]   ;;  %s1234_s7 = inlined_call_operand.vmem [shape: f32[2,16,128], index: 7, kind: output, shape index: {}]  }
   0x1 LB: > { %s782_s25 = sadd.s32 4294967295, %s1021_s24   ;;  %p786_p0 = scmp.ge.s32.totalorder %s1021_s24, 1  ;;  %s1021_s24 = sphi %s1064_s24, %s17_s24  }
   0x2   : > { %p237_p1 = scmp.lt.s32.totalorder %s1021_s24, 3 }
   0x4   : > { %p238_p2 = pnand %p786_p0, %p237_p1 }
   0x5   : > { %p269_p3 = scmp.lt.s32.totalorder (!%p238_p2), %s782_s25, 1 }
   0x6   : > { %241 = sbr.rel (%p238_p2) target bundleno = 487 (0x1e7), region = 48 }
   0xb   : > { %v967_v0 = vld [vmem:[%s1228_s1 + $0x38] sm:$0xff]  ;;  %v966_v1 = vld [vmem:[%s1228_s1 + $0x30] sm:$0xff]  ;;  %v965_v8 = vld [vmem:[%s1228_s1 + $0x28] sm:$0xff]  ;;  %s1236_s25 = smov (!%p269_p3, %s782_s25), 1  ;;  %v1023_v23 = vmov 0.0  }
   0xc   : > { %351 = vmatpush.bf16.msra.mxu0 %v967_v0  ;;  %v975_v2 = vld [vmem:[%s1230_s3 + $0x38] sm:$0xff]  ;;  %v974_v5 = vld [vmem:[%s1230_s3 + $0x30] sm:$0xff]  ;;  %v964_v9 = vld [vmem:[%s1228_s1 + $0x20] sm:$0xff]  ;;  %s957_s8 = sshll.u32 %s1236_s25, 3  ;;  %375 = vst [vmem:[#allocation2] sm:$0xff] %v1023_v23  ;;  %s958_s18 = sshll.u32 %s1236_s25, 4 }
   0xd   : > { %v983_v3 = vld [vmem:[%s1230_s3 + $0x78] sm:$0xff]  ;;  %580 = vmatpush.bf16.msra.mxu1 %v975_v2  ;;  %v982_v6 = vld [vmem:[%s1230_s3 + $0x70] sm:$0xff]  ;;  %v961_v12 = vld [vmem:[%s1228_s1 + $0x8] sm:$0xff]  ;;  %s1120_s13 = scalar_lea.vmem %s1227_s0, %s957_s8  ;;  %376 = vst [vmem:[#allocation2 + $0x18] sm:$0xff] %v1023_v23  ;;  %s278_s21 = scalar_lea.vmem %s1234_s7, %s958_s18 }
   0xe   : > { %v991_v4 = vld [vmem:[%s1230_s3 + $0xb8] sm:$0xff]  ;;  %v990_v7 = vld [vmem:[%s1230_s3 + $0xb0] sm:$0xff]  ;;  %594 = vmatpush.bf16.msra.mxu2 %v983_v3  ;;  %v960_v13 = vld [vmem:[%s1228_s1] sm:$0xff] }
   0xf   : > { %608 = vmatpush.bf16.msra.mxu3 %v991_v4  ;;  %v963_v10 = vld [vmem:[%s1228_s1 + $0x18] sm:$0xff]  ;;  %v962_v11 = vld [vmem:[%s1228_s1 + $0x10] sm:$0xff]  ;;  %v959_v14 = vld [vmem:[%s1120_s13] sm:$0xff] }
  0x10   : > { %352 = vmatpush.bf16.msra.mxu0 %v966_v1  ;;  %v981_v15 = vld [vmem:[%s1230_s3 + $0x68] sm:$0xff]  ;;  %v980_v16 = vld [vmem:[%s1230_s3 + $0x60] sm:$0xff]  ;;  %v979_v19 = vld [vmem:[%s1230_s3 + $0x58] sm:$0xff] }
  0x11   : > { %581 = vmatpush.bf16.msra.mxu1 %v974_v5  ;;  %v973_v17 = vld [vmem:[%s1230_s3 + $0x28] sm:$0xff]  ;;  %v972_v20 = vld [vmem:[%s1230_s3 + $0x20] sm:$0xff]  ;;  %v978_v22 = vld [vmem:[%s1230_s3 + $0x50] sm:$0xff] }
  0x12   : > { %595 = vmatpush.bf16.msra.mxu2 %v982_v6  ;;  %v989_v18 = vld [vmem:[%s1230_s3 + $0xa8] sm:$0xff]  ;;  %v988_v21 = vld [vmem:[%s1230_s3 + $0xa0] sm:$0xff]  ;;  %v971_v24 = vld [vmem:[%s1230_s3 + $0x18] sm:$0xff] }
  0x13   : > { %609 = vmatpush.bf16.msra.mxu3 %v990_v7  ;;  %v987_v25 = vld [vmem:[%s1230_s3 + $0x98] sm:$0xff]  ;;  %v977_v26 = vld [vmem:[%s1230_s3 + $0x48] sm:$0xff]  ;;  %v970_v27 = vld [vmem:[%s1230_s3 + $0x10] sm:$0xff] }
  0x14   : > { %353 = vmatpush.bf16.msra.mxu0 %v965_v8  ;;  %v986_v28 = vld [vmem:[%s1230_s3 + $0x90] sm:$0xff]  ;;  %v976_v29 = vld [vmem:[%s1230_s3 + $0x40] sm:$0xff]  ;;  %v969_v30 = vld [vmem:[%s1230_s3 + $0x8] sm:$0xff] }
  0x15   : > { %582 = vmatpush.bf16.msra.mxu1 %v973_v17  ;;  %v985_v31 = vld [vmem:[%s1230_s3 + $0x88] sm:$0xff]  ;;  %v968_v32 = vld [vmem:[%s1230_s3] sm:$0xff]  ;;  %v999_v34 = vld [vmem:[%s1232_s5 + $0x38] sm:$0xff] }
  0x16   : > { %596 = vmatpush.bf16.msra.mxu2 %v981_v15  ;;  %v984_v33 = vld [vmem:[%s1230_s3 + $0x80] sm:$0xff]  ;;  %v998_v52 = vld [vmem:[%s1232_s5 + $0x30] sm:$0xff]  ;;  %v997_v53 = vld [vmem:[%s1232_s5 + $0x28] sm:$0xff] }
  0x17   : > { %610 = vmatpush.bf16.msra.mxu3 %v989_v18  ;;  %v1009_v35 = vld [vmem:[%s1229_s2] ss:$0 sm:$0xff]  ;;  %v1010_v36 = vld [vmem:[%s1229_s2 + $0x1] ss:$0 sm:$0xff]  ;;  %v995_v55 = vld [vmem:[%s1232_s5 + $0x18] sm:$0xff] }
  0x18   : > { %354 = vmatpush.bf16.msra.mxu0 %v964_v9  ;;  %v996_v54 = vld [vmem:[%s1232_s5 + $0x20] sm:$0xff]  ;;  %v994_v56 = vld [vmem:[%s1232_s5 + $0x10] sm:$0xff]  ;;  %v993_v57 = vld [vmem:[%s1232_s5 + $0x8] sm:$0xff] }
  0x19   : > { %583 = vmatpush.bf16.msra.mxu1 %v972_v20  ;;  %v992_v58 = vld [vmem:[%s1232_s5] sm:$0xff] }
  0x1a   : > { %597 = vmatpush.bf16.msra.mxu2 %v980_v16  ;;  %v1011_v0 = vld [vmem:[%s1231_s4] ss:$0 sm:$0xff]  ;;  %v1012_v4 = vld [vmem:[%s1231_s4 + $0x1] ss:$0 sm:$0xff] }
  0x1b   : > { %611 = vmatpush.bf16.msra.mxu3 %v988_v21  ;;  %v279_v15 = vld [vmem:[%s1120_s13] sm:$0xff]  }
  0x1c   : > { %355 = vmatpush.bf16.msra.mxu0 %v963_v10  ;;  %v1014_v16 = vld [vmem:[%s1233_s6 + $0x1] ss:$0 sm:$0xff] }
  0x1d   : > { %584 = vmatpush.bf16.msra.mxu1 %v971_v24 }
  0x1e   : > { %598 = vmatpush.bf16.msra.mxu2 %v979_v19  ;;  %v719_v19 = vunpack.c.l.bf16 %v279_v15 }
  0x1f   : > { %612 = vmatpush.bf16.msra.mxu3 %v987_v25  ;;  %v720_v25 = vunpack.c.h.bf16 %v279_v15 }
  0x20   : > { %356 = vmatpush.bf16.msra.mxu0 %v962_v11 }
  0x21   : > { %585 = vmatpush.bf16.msra.mxu1 %v970_v27 }
  0x22   : > { %599 = vmatpush.bf16.msra.mxu2 %v978_v22 }
  0x23   : > { %613 = vmatpush.bf16.msra.mxu3 %v986_v28 }
  0x24   : > { %357 = vmatpush.bf16.msra.mxu0 %v961_v12 }
  0x25   : > { %586 = vmatpush.bf16.msra.mxu1 %v969_v30 }
  0x26   : > { %600 = vmatpush.bf16.msra.mxu2 %v977_v26 }
  0x27   : > { %614 = vmatpush.bf16.msra.mxu3 %v985_v31 }
  0x28   : > { %358 = vmatpush.bf16.msra.mxu0 %v960_v13 }
  0x29   : > { %587 = vmatpush.bf16.msra.mxu1 %v968_v32 }
  0x2a   : > { %601 = vmatpush.bf16.msra.mxu2 %v976_v29 }
  0x2b   : > { %359 = vmatmul.bf16.vlgmr.msra.gmra.mxu0 %v959_v14  ;;  %615 = vmatpush.bf16.msra.mxu3 %v984_v33  ;;  %v1013_v14 = vld [vmem:[%s1233_s6] ss:$0 sm:$0xff] }
  0x2c   : > { %697 = vmatpush.bf16.msrb.mxu0 %v999_v34 }
  0x30   : > { %698 = vmatpush.bf16.msrb.mxu0 %v998_v52 }
  0x34   : > { %699 = vmatpush.bf16.msrb.mxu0 %v997_v53 }
  0x38   : > { %700 = vmatpush.bf16.msrb.mxu0 %v996_v54 }
  0x3c   : > { %701 = vmatpush.bf16.msrb.mxu0 %v995_v55 }
  0x40   : > { %702 = vmatpush.bf16.msrb.mxu0 %v994_v56 }
  0x44   : > { %703 = vmatpush.bf16.msrb.mxu0 %v993_v57 }
  0x48   : > { %704 = vmatpush.bf16.msrb.mxu0 %v992_v58 }
  0xa8   : > { %v360_v37 = vpop.f32.mrf.mxu0 }
  0xa9   : > { %v367_v38 = vmul.f32 %v1009_v35, %v360_v37 }
  0xab   : > { %v371_v39 = vadd.f32 %v1010_v36, %v367_v38 }
  0xad   : > { %v373_v40 = vmax.f32 %v371_v39, 0.0 }
  0xaf   : > { %377 = vst [vmem:[#allocation2 + $0x8] sm:$0xff] %v373_v40 }
  0xb0   : > { %v362_v41 = vpop.f32.mrf.mxu0 }
  0xb1   : > { %v368_v42 = vmul.f32 %v1009_v35, %v362_v41 }
  0xb3   : > { %v372_v43 = vadd.f32 %v1010_v36, %v368_v42 }
  0xb5   : > { %v374_v44 = vmax.f32 %v372_v43, 0.0 }
  0xb6   : > { %v379_v46 = vld [vmem:[#allocation2 + $0x7] sm:$0xff] }
  0xb7   : > { %378 = vst [vmem:[#allocation2 + $0x10] sm:$0xff] %v374_v44  ;;  %v386_v45 = vpack.c.bf16 %v374_v44, %v373_v40 }
  0xb9   : > { %602 = vmatmul.bf16.vlgmr.msra.gmra.mxu2 %v386_v45 }
  0xbe   : > { %v380_v47 = vld [vmem:[#allocation2 + $0xf] sm:$0xff] }
  0xbf   : > { %v383_v48 = vld [vmem:[#allocation2 + $0x9] sm:$0xff]  ;;  %v384_v49 = vld [vmem:[#allocation2 + $0x11] sm:$0xff]  ;;  %v385_v50 = vpack.c.bf16 %v380_v47, %v379_v46 }
  0xc0   : > { %v387_v51 = vpack.c.bf16 %v384_v49, %v383_v48 }
  0xc1   : > { %588 = vmatmul.bf16.vlgmr.msra.gmra.mxu1 %v385_v50 }
  0xc2   : > { %616 = vmatmul.bf16.vlgmr.msra.gmra.mxu3 %v387_v51 }
 0x13c   : > { %v603_v60 = vpop.f32.mrf.mxu2 }
 0x13e   : > { %v589_v59 = vpop.f32.mrf.mxu1 }
 0x13f   : > { %v604_v62 = vadd.f32 %v603_v60, %v589_v59 }
 0x144   : > { %v605_v2 = vpop.f32.mrf.mxu2 }
 0x145   : > { %v617_v61 = vpop.f32.mrf.mxu3 }
 0x146   : > { %v618_v63 = vadd.f32 %v617_v61, %v604_v62  ;;  %v591_v1 = vpop.f32.mrf.mxu1 }
 0x147   : > { %v606_v5 = vadd.f32 %v605_v2, %v591_v1 }
 0x148   : > { %v624_v3 = vmul.f32 %v1011_v0, %v618_v63 }
 0x14a   : > { %v628_v8 = vadd.f32 %v1012_v4, %v624_v3 }
 0x14c   : > { %v630_v11 = vmax.f32 %v628_v8, 0.0 }
 0x14d   : > { %v619_v6 = vpop.f32.mrf.mxu3 }
 0x14e   : > { %v620_v7 = vadd.f32 %v619_v6, %v606_v5 }
 0x150   : > { %v625_v9 = vmul.f32 %v1011_v0, %v620_v7 }
 0x152   : > { %v629_v10 = vadd.f32 %v1012_v4, %v625_v9 }
 0x154   : > { %v631_v12 = vmax.f32 %v629_v10, 0.0 }
 0x156   : > { %v632_v13 = vpack.c.bf16 %v631_v12, %v630_v11 }
 0x158   : > { %705 = vmatmul.bf16.vlgmr.msrb.gmra.mxu0 %v632_v13 }
 0x1d5   : > { %v706_v17 = vpop.f32.mrf.mxu0 }
 0x1d6   : > { %v713_v18 = vmul.f32 %v1013_v14, %v706_v17 }
 0x1d8   : > { %v717_v20 = vadd.f32 %v1014_v16, %v713_v18 }
 0x1da   : > { %v721_v21 = vadd.f32 %v719_v19, %v717_v20 }
 0x1dc   : > { %v723_v22 = vmax.f32 %v721_v21, 0.0 }
 0x1dd   : > { %v708_v23 = vpop.f32.mrf.mxu0 }
 0x1de   : > { %725 = vst [vmem:[%s278_s21] sm:$0xff] %v723_v22  ;;  %v714_v24 = vmul.f32 %v1013_v14, %v708_v23 }
 0x1e0   : > { %v718_v26 = vadd.f32 %v1014_v16, %v714_v24 }
 0x1e2   : > { %v722_v27 = vadd.f32 %v720_v25, %v718_v26 }
 0x1e4   : > { %v724_v28 = vmax.f32 %v722_v27, 0.0 }
 0x1e6   : > { %726 = vst [vmem:[%s278_s21 + $0x8] sm:$0xff] %v724_v28 }
 0x1e7 PF: > { %s17_s24 = sadd.s32 1, %s1021_s24  }
 0x1e8   : > { %p14_p4 = scmp.ge.s32.totalorder %s17_s24, 4  }
 0x1ea   :  { %16 = sbr.rel (!%p14_p4) target bundleno = 1 (0x1), region = 78 }

</bundles_post_ra>
